<compile_context>
chip_gen: v7x
topology: tpu7x:2x2x1
jax: 0.10.0
libtpu: 0.0.40
codegen_flags: <defaults>
</compile_context>

<pallas_src>
import jax
import jax.numpy as jnp
from jax.experimental import pallas as pl
from jax.experimental.pallas import tpu as pltpu  # noqa: F401  (TPU backend)

BN_EPS = 1e-5
K_IN = 3       # Linear in_features
F_OUT = 10     # Linear out_features
F_PAD = 128    # lane-dense padded feature width
P_ROWS = 8     # packed parameter slab rows (exactly one (8,128) VMEM tile)


def covariate_kernel(x_ref, p_ref, o_ref):
    """x: (N, 3) f32; p: (8, 128) packed params; o: (N, 10) f32.

    p rows: 0-2 = W^T (zero-padded 10->128 lanes), 3 = gamma, 4 = beta, 5-7 = 0.
    """
    x = x_ref[...]

    # Linear (bias dropped -- cancels against the training-mode BN mean
    # subtraction).  K=3 unrolled VPU multiply-add.
    # TODO(synk): if N scales, switch to jnp.dot (MXU) so the 3 lane-broadcasts
    # per row-vreg don't become the binding XLU slot.
    y = x[:, 0:1] * p_ref[0:1, :]
    y = y + x[:, 1:2] * p_ref[1:2, :]
    y = y + x[:, 2:3] * p_ref[2:3, :]                        # (N, 128) f32

    # BatchNorm1d (training mode): batch mean / biased variance per feature,
    # folded into (1,128) scale/shift constants so the (N,128) epilogue is a
    # single multiply + add per row-vreg (rsqrt rides the EUP slot).
    mean = jnp.mean(y, axis=0, keepdims=True)                # (1, 128)
    d = y - mean
    var = jnp.mean(d * d, axis=0, keepdims=True)             # (1, 128)
    scale = jax.lax.rsqrt(var + BN_EPS) * p_ref[3:4, :]      # gamma folded in
    shift = p_ref[4:5, :] - mean * scale                     # beta - mean*scale

    y_bn = y * scale + shift                                 # (N, 128)

    # ReLU + store only the 10 real features: one masked vst, no extra
    # wrapper-side slice dispatch, no dead-lane HBM writeback.
    o_ref[...] = jnp.maximum(y_bn[:, :F_OUT], 0.0).astype(o_ref.dtype)


def pack_covariate_params(w, b, gamma, beta):
    """Pack Linear/BatchNorm parameters into one (8, 128) f32 slab.

    Called ONCE at init (hoisted out of the per-forward path).  The Linear
    bias `b` is dropped because training-mode BatchNorm1d subtracts the
    per-feature batch mean immediately afterwards, cancelling it exactly.
    """
    del b  # exactly cancelled by the training-mode BN mean subtraction
    f_out = w.shape[0]
    p = jnp.zeros((P_ROWS, F_PAD), jnp.float32)
    p = p.at[:K_IN, :f_out].set(w.T.astype(jnp.float32))        # rows 0-2: W^T
    p = p.at[K_IN, :f_out].set(gamma.astype(jnp.float32))       # row 3: gamma
    p = p.at[K_IN + 1, :f_out].set(beta.astype(jnp.float32))    # row 4: beta
    return p


def covariate_forward(x, packed_params):
    """x: (N, 3) f32; packed_params: (8, 128) from pack_covariate_params.

    The whole batch is a single VMEM-resident block (BN statistics need the
    full batch axis); no grid / no pipelining.  If N grows large, this must
    become a gridded two-pass BN (pass 1: per-block partial sum/sumsq; pass 2:
    normalize) with dimension_semantics=("parallel",) — and note the scoped
    VMEM ceilings differ: v5e 16 MiB default, v6e 32 MiB, v7x 64 MiB physical.
    """
    n, k_in = x.shape
    assert k_in == K_IN
    return pl.pallas_call(
        covariate_kernel,
        out_shape=jax.ShapeDtypeStruct((n, F_OUT), jnp.float32),
    )(x.astype(jnp.float32), packed_params)


if __name__ == "__main__":
    key = jax.random.PRNGKey(0)
    k_x, k_w, k_b = jax.random.split(key, 3)

    N = 8  # small batch; (N, 3) input as implied by nn.Linear(3, 10)

    x = jax.random.normal(k_x, (N, K_IN), dtype=jnp.float32)
    w = jax.random.normal(k_w, (F_OUT, K_IN), dtype=jnp.float32) * 0.5  # (10, 3)
    b = jax.random.normal(k_b, (F_OUT,), dtype=jnp.float32) * 0.1       # (10,)
    gamma = jnp.ones((F_OUT,), dtype=jnp.float32)   # BatchNorm1d affine defaults
    beta = jnp.zeros((F_OUT,), dtype=jnp.float32)

    # Parameter packing is done once here (init time), not per forward call.
    params = jax.block_until_ready(pack_covariate_params(w, b, gamma, beta))

    out = covariate_forward(x, params)
    out = jax.block_until_ready(out)

    # Pure-JAX reference of the original module semantics (bias included; it
    # cancels under training-mode BN, so the bias-free kernel must match).
    y_ref = x @ w.T + b
    m = y_ref.mean(axis=0, keepdims=True)
    v = ((y_ref - m) ** 2).mean(axis=0, keepdims=True)
    ref = jnp.maximum((y_ref - m) / jnp.sqrt(v + BN_EPS) * gamma + beta, 0.0)

    assert out.shape == (N, F_OUT)
    assert jnp.allclose(out, ref, atol=1e-4, rtol=1e-4)

    print("KERNEL_OK")
</pallas_src>

<mosaic_0001>
module attributes {stable_mosaic.version = 11 : i64} {
  func.func @covariate_kernel(%arg0: memref<8x3xf32, #tpu.memory_space<vmem>>, %arg1: memref<8x128xf32, #tpu.memory_space<vmem>>, %arg2: memref<8x10xf32, #tpu.memory_space<vmem>>) attributes {dimension_semantics = [], scalar_prefetch = 0 : i64, scratch_operands = 0 : i64, tpu.core_type = #tpu.core_type<tc>} {
    %c0 = arith.constant 0 : index
    %c0_0 = arith.constant 0 : index
    %0 = vector.load %arg0[%c0, %c0_0] : memref<8x3xf32, #tpu.memory_space<vmem>>, vector<8x3xf32>
    %1 = vector.extract_strided_slice %0 {offsets = [0, 0], sizes = [8, 1], strides = [1, 1]} : vector<8x3xf32> to vector<8x1xf32>
    %c0_1 = arith.constant 0 : index
    %c0_2 = arith.constant 0 : index
    %2 = vector.load %arg1[%c0_1, %c0_2] : memref<8x128xf32, #tpu.memory_space<vmem>>, vector<1x128xf32>
    %3 = vector.broadcast %1 : vector<8x1xf32> to vector<8x128xf32>
    %4 = vector.broadcast %2 : vector<1x128xf32> to vector<8x128xf32>
    %5 = arith.mulf %3, %4 : vector<8x128xf32>
    %6 = vector.extract_strided_slice %0 {offsets = [0, 1], sizes = [8, 1], strides = [1, 1]} : vector<8x3xf32> to vector<8x1xf32>
    %c1 = arith.constant 1 : index
    %c0_3 = arith.constant 0 : index
    %7 = vector.load %arg1[%c1, %c0_3] : memref<8x128xf32, #tpu.memory_space<vmem>>, vector<1x128xf32>
    %8 = vector.broadcast %6 : vector<8x1xf32> to vector<8x128xf32>
    %9 = vector.broadcast %7 : vector<1x128xf32> to vector<8x128xf32>
    %10 = arith.mulf %8, %9 : vector<8x128xf32>
    %11 = arith.addf %5, %10 : vector<8x128xf32>
    %12 = vector.extract_strided_slice %0 {offsets = [0, 2], sizes = [8, 1], strides = [1, 1]} : vector<8x3xf32> to vector<8x1xf32>
    %c2 = arith.constant 2 : index
    %c0_4 = arith.constant 0 : index
    %13 = vector.load %arg1[%c2, %c0_4] : memref<8x128xf32, #tpu.memory_space<vmem>>, vector<1x128xf32>
    %14 = vector.broadcast %12 : vector<8x1xf32> to vector<8x128xf32>
    %15 = vector.broadcast %13 : vector<1x128xf32> to vector<8x128xf32>
    %16 = arith.mulf %14, %15 : vector<8x128xf32>
    %17 = arith.addf %11, %16 : vector<8x128xf32>
    %cst = arith.constant dense<0.000000e+00> : vector<128xf32>
    %18 = vector.multi_reduction <add>, %17, %cst [0] : vector<8x128xf32> to vector<128xf32>
    %19 = vector.shape_cast %18 : vector<128xf32> to vector<1x128xf32>
    %cst_5 = arith.constant 8.000000e+00 : f32
    %20 = vector.broadcast %cst_5 : f32 to vector<1x128xf32>
    %21 = arith.divf %19, %20 : vector<1x128xf32>
    %22 = vector.broadcast %21 : vector<1x128xf32> to vector<8x128xf32>
    %23 = arith.subf %17, %22 : vector<8x128xf32>
    %24 = arith.mulf %23, %23 : vector<8x128xf32>
    %cst_6 = arith.constant dense<0.000000e+00> : vector<128xf32>
    %25 = vector.multi_reduction <add>, %24, %cst_6 [0] : vector<8x128xf32> to vector<128xf32>
    %26 = vector.shape_cast %25 : vector<128xf32> to vector<1x128xf32>
    %cst_7 = arith.constant 8.000000e+00 : f32
    %27 = vector.broadcast %cst_7 : f32 to vector<1x128xf32>
    %28 = arith.divf %26, %27 : vector<1x128xf32>
    %cst_8 = arith.constant 9.99999974E-6 : f32
    %29 = vector.broadcast %cst_8 : f32 to vector<1x128xf32>
    %30 = arith.addf %28, %29 : vector<1x128xf32>
    %31 = math.rsqrt %30 : vector<1x128xf32>
    %c3 = arith.constant 3 : index
    %c0_9 = arith.constant 0 : index
    %32 = vector.load %arg1[%c3, %c0_9] : memref<8x128xf32, #tpu.memory_space<vmem>>, vector<1x128xf32>
    %33 = arith.mulf %31, %32 : vector<1x128xf32>
    %c4 = arith.constant 4 : index
    %c0_10 = arith.constant 0 : index
    %34 = vector.load %arg1[%c4, %c0_10] : memref<8x128xf32, #tpu.memory_space<vmem>>, vector<1x128xf32>
    %35 = arith.mulf %21, %33 : vector<1x128xf32>
    %36 = arith.subf %34, %35 : vector<1x128xf32>
    %37 = vector.broadcast %33 : vector<1x128xf32> to vector<8x128xf32>
    %38 = arith.mulf %17, %37 : vector<8x128xf32>
    %39 = vector.broadcast %36 : vector<1x128xf32> to vector<8x128xf32>
    %40 = arith.addf %38, %39 : vector<8x128xf32>
    %41 = vector.extract_strided_slice %40 {offsets = [0, 0], sizes = [8, 10], strides = [1, 1]} : vector<8x128xf32> to vector<8x10xf32>
    %cst_11 = arith.constant 0.000000e+00 : f32
    %42 = vector.broadcast %cst_11 : f32 to vector<8x10xf32>
    %43 = arith.maximumf %41, %42 : vector<8x10xf32>
    %c0_12 = arith.constant 0 : index
    %c0_13 = arith.constant 0 : index
    %44 = vector.load %arg2[%c0_12, %c0_13] : memref<8x10xf32, #tpu.memory_space<vmem>>, vector<8x10xf32>
    tpu.vector_store %arg2[%c0_12, %c0_13], %43 {strides = array<i32>} : memref<8x10xf32, #tpu.memory_space<vmem>>, vector<8x10xf32>,
    return
  }
}

</mosaic_0001>

<bundles_post_ra>
// kernel: tpu_custom_call.1
= control target key start
LH: loop header
LB: loop body
LE: loop exit
PB: predicated region body
PF: predicated region fallthrough
CT: control target
= control target key end

     0   :  { %v134_v1 = vmov 0   ;;  %v135_v2 = vmov 2   ;;  %s183_s0 = inlined_call_operand.vmem [shape: f32[8,3], index: 0, kind: input, shape index: {}]   ;;  %s184_s1 = inlined_call_operand.vmem [shape: f32[8,128], index: 1, kind: input, shape index: {}]   ;;  %s185_s2 = inlined_call_operand.hbm [shape: f32[8,10], index: 2, kind: output, shape index: {}]  }
   0x1   :  { %v12_v0 = vld [vmem:[%s183_s0] sm:$0xff]  ;;  %104 = vset.pattern.permute.xlu0 %v134_v1  ;;  %106 = vset.pattern.permute.xlu1 %v135_v2 }
   0x2   :  { %7 = vsyncpa [#allocation3], 0  ;;  %16 = vperm.xlu0 %104, %v12_v0   ;;  %37 = vperm.xlu1 %106, %v12_v0   ;;  %v136_v3 = vmov 1   ;;  %v97_v5 = vld [vmem:[%s184_s1] ss:$0 sm:$0xff]  ;;  %v70_v32 = vlaneseq  ;;  %s137_s20 = smov [#allocation2]  }
   0x3   :  { %v98_v6 = vld [vmem:[%s184_s1 + $0x1] ss:$0 sm:$0xff]  ;;  %v99_v7 = vld [vmem:[%s184_s1 + $0x2] ss:$0 sm:$0xff]  ;;  %v65_v34 = vld [vmem:[%s184_s1 + $0x3] sm:$0x1] }
   0x4   :  { %v71_v33 = vshrl.u32 %v70_v32, 7  ;;  %v67_v38 = vld [vmem:[%s184_s1 + $0x4] sm:$0x1]  ;;  %s89_s21 = sshll.u32 %s137_s20, 4  ;;  %vm81_vm0 = vcmask 80896   ;;  %s90_s21 = int_to_ptr.vmem [resolvable:$true] %s89_s21 }
   0x5   :  { %s110_s22 = scalar_lea.vmem %s90_s21, 128  ;;  %p115_p1 = scmp.lt.s32.totalorder %s90_s21, %s90_s21 }
   0x6   :  { %105 = vset.pattern.permute.xlu0 %v136_v3  ;;  %v72_v35 = vsub.s32 0, %v71_v33  ;;  %p111_p0 = scmp.ne.s32.totalorder %s90_s21, %s110_s22  ;;  %p116_p2 = scmp.lt.s32.totalorder %s110_s22, %s110_s22 }
   0x7   :  { %26 = vperm.xlu0 %105, %v12_v0  }
   0x8   :  { %p117_p3 = por %p116_p2, %p115_p1 }
   0xa   :  { %p118_p4 = pnand %p117_p3, %p111_p0 }
   0xb   :  { %107 = vset.pattern.permute.xlu0 %v135_v2 }
  0x81   :  { %v17_v4 = vpop.permute.xlu0 %16  ;;  %v38_v8 = vpop.permute.xlu1 %37 }
  0x82   :  { %v23_v10 = vmul.f32 %v97_v5, %v17_v4  ;;  %v44_v12 = vmul.f32 %v99_v7, %v38_v8 }
  0x86   :  { %v27_v9 = vpop.permute.xlu0 %26 }
  0x87   :  { %v33_v11 = vmul.f32 %v98_v6, %v27_v9 }
  0x89   :  { %v34_v13 = vadd.f32 %v33_v11, %v23_v10 }
  0x8b   :  { %v45_v14 = vadd.f32 %v44_v12, %v34_v13 }
  0x8d   :  { %v46_v15 = vrot.slane %v45_v14, 4 }
  0x8f   :  { %v47_v16 = vadd.f32 %v46_v15, %v45_v14 }
  0x91   :  { %v48_v17 = vrot.slane %v47_v16, 2 }
  0x93   :  { %v49_v18 = vadd.f32 %v48_v17, %v47_v16 }
  0x95   :  { %v50_v19 = vrot.slane %v49_v18, 1 }
  0x97   :  { %v51_v20 = vadd.f32 %v50_v19, %v49_v18 }
  0x99   :  { %v53_v21 = vmul.f32 0.125, %v51_v20 }
  0x9b   :  { %v54_v22 = vsub.f32 %v45_v14, %v53_v21 }
  0x9d   :  { %v55_v23 = vmul.f32 %v54_v22, %v54_v22 }
  0x9f   :  { %v56_v24 = vrot.slane %v55_v23, 4 }
  0xa1   :  { %v57_v25 = vadd.f32 %v56_v24, %v55_v23 }
  0xa3   :  { %v58_v26 = vrot.slane %v57_v25, 2 }
  0xa5   :  { %v59_v27 = vadd.f32 %v58_v26, %v57_v25 }
  0xa7   :  { %v60_v28 = vrot.slane %v59_v27, 1 }
  0xa9   :  { %v61_v29 = vadd.f32 %v60_v28, %v59_v27 }
  0xab   :  { %v62_v30 = vmul.f32 0.125, %v61_v29 }
  0xad   :  { %v63_v31 = vadd.f32 1e-05, %v62_v30 }
  0xaf   :  { %108 = vrsqrt.f32 %v63_v31 }
  0xb9   :  { %v109_v36 = vpop.eup %108 }
  0xba   :  { %v66_v37 = vmul.f32 %v109_v36, %v65_v34 }
  0xbc   :  { %v68_v39 = vmul.f32 %v66_v37, %v53_v21  ;;  %v73_v40 = vrot.slane %v66_v37, %v72_v35 }
  0xbe   :  { %v69_v41 = vsub.f32 %v67_v38, %v68_v39  ;;  %v74_v42 = vmul.f32 %v73_v40, %v45_v14 }
  0xc0   :  { %v78_v43 = vrot.slane %v69_v41, %v72_v35 }
  0xc2   :  { %v79_v44 = vadd.f32 %v78_v43, %v74_v42 }
  0xc4   :  { %v80_v45 = vmax.f32 %v79_v44, 0.0 }
  0xc6   :  { %82 = vst.msk [vmem:[#allocation2] sm:$0xff] %vm81_vm0, %v80_v45 }
  0xc7   :  { %121 = shalt.err (!%p118_p4)
}
  0xc8   :  { %s122_s24 = scalar_lea.hbm %s185_s2, 128 }
  0xc9   :  { %p123_p5 = scmp.ne.s32.totalorder %s185_s2, %s122_s24  ;;  %p126_p6 = scmp.lt.u32.totalorder %s122_s24, %s185_s2 }
  0xcb   :  { %p128_p7 = pnand %p126_p6, %p123_p5 }
  0xcd   :  { %131 = shalt.err (!%p128_p7)
}
  0xce   :  { %92 = dma.vmem_to_hbm [thread:$0]  %s90_s21, 128, %s185_s2, [#allocation3]  }
  0xcf   :  { %132 = dma.done.wait [#allocation3], 128  }
  0xd0   :  { %133 = vsyncadd [#allocation3], 4294967168 }
  0xd1   :  { %96 = vsyncpa [#allocation3], 1 }

</bundles_post_ra>
